<compile_context>
chip_gen: v5e
topology: v5e:2x2
jax: 0.10.0
libtpu: 0.0.40
codegen_flags: <defaults>
</compile_context>

<pallas_src>
import jax
import jax.numpy as jnp
from jax import lax
from jax.experimental import pallas as pl
from jax.experimental.pallas import tpu as pltpu

_NEG_BIG = -1e30          # bias for padded classes -> softmax mass exactly 0
_LANE = 128
_SMALL_BYPASS_ELEMS = 1 << 20   # below this many output elements, use XLA


def _round_up(x, m):
    return (x + m - 1) // m * m


def _cdiv(a, b):
    return -(-a // b)


def _vmem_capacity_bytes():
    """Physical per-TC VMEM; conservative (v7x, 64 MiB) if the query fails."""
    try:
        cap = int(getattr(pltpu.get_tpu_info(), "vmem_capacity_bytes"))
        if cap > 0:
            return cap
    except Exception:
        pass
    return 64 * 2**20


# ----------------------------------------------------------------------------
# Kernels
# ----------------------------------------------------------------------------
def _softmax_store(logits, o_ref):
    m = jnp.max(logits, axis=-1, keepdims=True)
    e = jnp.exp(logits - m)
    s = jnp.sum(e, axis=-1, keepdims=True)
    # Reciprocal goes to the EUP slot instead of VPU divides.
    o_ref[...] = (e * pl.reciprocal(s, approx=True)).astype(o_ref.dtype)


def _fused_kernel(x_ref, w_ref, b_ref, o_ref):
    # x_ref: (C, tw) already in the matmul dtype. Contract C on dim 0 of both
    # operands -> MXU transposed-LHS path, no XLU vxpose, no f32 vreg copy.
    logits = lax.dot_general(
        x_ref[...], w_ref[...],
        dimension_numbers=(((0,), (0,)), ((), ())),
        preferred_element_type=jnp.float32)                 # (tw, nc_pad)
    _softmax_store(logits + b_ref[...], o_ref)


def _two_stage_kernel(x_ref, w1_ref, b1_ref, w2_ref, b2_ref, o_ref):
    h = lax.dot_general(
        x_ref[...], w1_ref[...],
        dimension_numbers=(((0,), (0,)), ((), ())),
        preferred_element_type=jnp.float32)                 # (tw, h_pad)
    h = (h + b1_ref[...]).astype(w2_ref.dtype)              # bias in f32
    logits = jnp.dot(h, w2_ref[...], preferred_element_type=jnp.float32)
    _softmax_store(logits + b2_ref[...], o_ref)


# ----------------------------------------------------------------------------
# One-time weight preparation (hoisted out of the forward path)
# ----------------------------------------------------------------------------
def prepare_params(params, *, matmul_dtype=jnp.bfloat16, fuse=None):
    """Pad / cast / (optionally) fuse the neck+head weights once at load time.

    The 'fc' neck has no activation between the two Linears, so they can be
    fused into a single matmul whenever that does not increase per-row FLOPs
    (small vocabularies); large-vocab CTC keeps the two-stage path.
    Note: fused weights (w1@w2 in f32, then one bf16 cast) round slightly
    differently than the two-stage bf16 path.
    """
    w1 = jnp.asarray(params["w1"], jnp.float32)
    b1 = jnp.asarray(params["b1"], jnp.float32).reshape(1, -1)
    w2 = jnp.asarray(params["w2"], jnp.float32)
    b2 = jnp.asarray(params["b2"], jnp.float32).reshape(1, -1)
    C, hidden = w1.shape
    n_class = w2.shape[1]
    nc_pad = _round_up(n_class, _LANE)
    h_pad = _round_up(hidden, _LANE)
    if fuse is None:
        fuse = C * n_class <= C * hidden + hidden * n_class

    prep = dict(matmul_dtype=jnp.dtype(matmul_dtype), fuse=bool(fuse),
                in_channels=C, hidden=hidden, n_class=n_class,
                nc_pad=nc_pad, h_pad=h_pad)
    if fuse:
        w_f = w1 @ w2                       # (C, n_class)
        b_f = b1 @ w2 + b2                  # (1, n_class)
        prep["w"] = jnp.pad(w_f, ((0, 0), (0, nc_pad - n_class))).astype(matmul_dtype)
        prep["b"] = jnp.pad(b_f, ((0, 0), (0, nc_pad - n_class)),
                            constant_values=_NEG_BIG)
    else:
        prep["w1"] = jnp.pad(w1, ((0, 0), (0, h_pad - hidden))).astype(matmul_dtype)
        prep["b1"] = jnp.pad(b1, ((0, 0), (0, h_pad - hidden)))
        prep["w2"] = jnp.pad(w2, ((0, h_pad - hidden), (0, nc_pad - n_class))
                             ).astype(matmul_dtype)
        prep["b2"] = jnp.pad(b2, ((0, 0), (0, nc_pad - n_class)),
                             constant_values=_NEG_BIG)
    return prep


# ----------------------------------------------------------------------------
# Forward
# ----------------------------------------------------------------------------
def _xla_forward(x3, prep, out_dtype):
    # Small-shape bypass: fixed pallas_call overhead dominates toy shapes.
    xt = jnp.swapaxes(x3, 1, 2).astype(jnp.float32)          # (B, W, C)
    if prep["fuse"]:
        logits = xt @ prep["w"].astype(jnp.float32) + prep["b"]
    else:
        h = xt @ prep["w1"].astype(jnp.float32) + prep["b1"]
        logits = h @ prep["w2"].astype(jnp.float32) + prep["b2"]
    return jax.nn.softmax(logits, axis=-1).astype(out_dtype)


def _pick_width_tile(W, B, need_bytes, budget):
    """Largest 128-multiple width tile that fits the VMEM budget, does not
    over-pad W, and leaves >= 2 width blocks when B == 1 (v7x megacore)."""
    w128 = _round_up(W, _LANE)
    tw = _LANE
    for cand in (256, 512, 1024):
        if _round_up(W, cand) > max(w128, W + cand // 4):   # >~25% padding waste
            break
        if B == 1 and _cdiv(W, cand) < 2:                    # keep both TCs busy
            break
        if need_bytes(cand) > budget:
            break
        tw = cand
    return tw


def multihead_forward(x_nchw, prep, *, out_dtype=jnp.bfloat16, use_pallas=None):
    """ctc_out = softmax(Linear(Linear(Im2Seq(x)))).

    Returns (B, W, nc_pad) with the class axis padded to a multiple of 128;
    padded class probabilities are exactly 0 (no un-pad HBM copy is performed
    here — slice lazily or feed the padded tensor straight to argmax/decode).
    """
    B, C, H, W = x_nchw.shape
    assert H == 1, "Im2Seq requires H == 1"
    assert C == prep["in_channels"]

    fuse = prep["fuse"]
    nc_pad, h_pad = prep["nc_pad"], prep["h_pad"]
    mm_dtype = prep["matmul_dtype"]

    # Im2Seq squeeze only — no HBM (B, W, C) transpose. Cast to the matmul
    # dtype here so the (C, tw) input block DMAs at half width.
    x3 = x_nchw[:, :, 0, :].astype(mm_dtype)                 # (B, C, W)

    if use_pallas is None:
        use_pallas = B * W * nc_pad >= _SMALL_BYPASS_ELEMS
    if not use_pallas:
        return _xla_forward(x3, prep, out_dtype)

    mm_bytes = mm_dtype.itemsize
    out_bytes = jnp.dtype(out_dtype).itemsize
    if fuse:
        w_elems, b_elems, extra_h = C * nc_pad, nc_pad, 0
    else:
        w_elems, b_elems, extra_h = C * h_pad + h_pad * nc_pad, h_pad + nc_pad, h_pad

    def need_bytes(tw):
        in_blk = 2 * C * tw * mm_bytes                  # double-buffered input
        out_blk = 2 * tw * nc_pad * out_bytes           # double-buffered output
        wgt = w_elems * mm_bytes + b_elems * 4          # single-buffered weights
        inter = tw * (3 * nc_pad + extra_h) * 4         # f32 logits/exp/stats
        return in_blk + out_blk + wgt + inter

    # Generation-aware budget: ~3/4 of physical per-TC VMEM (48 MiB on v7x,
    # 96 MiB on v5e/v6e) keeps headroom for Mosaic scratch / semaphores.
    phys = _vmem_capacity_bytes()
    vmem_cap = min(phys * 3 // 4, phys - 8 * 2**20)

    tw = _pick_width_tile(W, B, need_bytes, vmem_cap)
    W_pad = _round_up(W, tw)
    if W_pad != W:
        x3 = jnp.pad(x3, ((0, 0), (0, 0), (0, W_pad - W)))

    vmem_limit = int(min(vmem_cap, max(need_bytes(tw) + 8 * 2**20, 32 * 2**20)))

    # Weights never change block index -> single-buffer them (saves VMEM that
    # lets tw grow one step, which matters most inside v7x's 64 MiB).
    wmode = pl.Buffered(1)
    if fuse:
        kernel = _fused_kernel
        winputs = (prep["w"], prep["b"])
        weight_specs = [
            pl.BlockSpec((C, nc_pad), lambda b, j: (0, 0), pipeline_mode=wmode),
            pl.BlockSpec((1, nc_pad), lambda b, j: (0, 0), pipeline_mode=wmode),
        ]
    else:
        kernel = _two_stage_kernel
        winputs = (prep["w1"], prep["b1"], prep["w2"], prep["b2"])
        weight_specs = [
            pl.BlockSpec((C, h_pad), lambda b, j: (0, 0), pipeline_mode=wmode),
            pl.BlockSpec((1, h_pad), lambda b, j: (0, 0), pipeline_mode=wmode),
            pl.BlockSpec((h_pad, nc_pad), lambda b, j: (0, 0), pipeline_mode=wmode),
            pl.BlockSpec((1, nc_pad), lambda b, j: (0, 0), pipeline_mode=wmode),
        ]

    out = pl.pallas_call(
        kernel,
        out_shape=jax.ShapeDtypeStruct((B, W_pad, nc_pad), out_dtype),
        grid_spec=pltpu.PrefetchScalarGridSpec(
            num_scalar_prefetch=0,
            grid=(B, W_pad // tw),
            in_specs=[pl.BlockSpec((None, C, tw), lambda b, j: (b, 0, j))]
            + weight_specs,
            out_specs=pl.BlockSpec((None, tw, nc_pad), lambda b, j: (b, j, 0)),
        ),
        compiler_params=pltpu.CompilerParams(
            dimension_semantics=("parallel", "parallel"),
            vmem_limit_bytes=vmem_limit,
        ),
    )(x3, *winputs)

    # Class axis stays padded (see docstring). Width is sliced back only when
    # a ragged W forced padding; the slice is lane-aligned (last dim nc_pad).
    if W_pad != W:
        out = out[:, :W, :]
    return out


# ----------------------------------------------------------------------------
# Test helpers
# ----------------------------------------------------------------------------
def make_params(key, in_channels, hidden_size, n_class, dtype=jnp.float32):
    k1, k2, k3, k4 = jax.random.split(key, 4)
    w1 = (jax.random.normal(k1, (in_channels, hidden_size), dtype)
          * (1.0 / jnp.sqrt(in_channels)).astype(dtype))
    b1 = jax.random.normal(k2, (1, hidden_size), dtype) * 0.01
    w2 = (jax.random.normal(k3, (hidden_size, n_class), dtype)
          * (1.0 / jnp.sqrt(hidden_size)).astype(dtype))
    b2 = jax.random.normal(k4, (1, n_class), dtype) * 0.01
    return {"w1": w1, "b1": b1, "w2": w2, "b2": b2}


def reference_forward(x_nchw, params):
    x_seq = jnp.transpose(x_nchw[:, :, 0, :], (0, 2, 1))
    h = x_seq @ params["w1"] + params["b1"][0]
    logits = h @ params["w2"] + params["b2"][0]
    return jax.nn.softmax(logits, axis=-1)


if __name__ == "__main__":
    B, C, H, W = 2, 32, 1, 16        # in_channels = 32, sequence length = W
    hidden_size = 48                 # EncoderWithFC hidden size
    n_class = 40                     # CTC vocabulary size

    key = jax.random.PRNGKey(0)
    kx, kp = jax.random.split(key)
    x = jax.random.normal(kx, (B, C, H, W), jnp.float32)
    params = make_params(kp, C, hidden_size, n_class)

    ref = reference_forward(x, params)
    nc_pad = _round_up(n_class, _LANE)

    # f32 matmuls, both fused-weight and two-stage paths, Pallas forced:
    # validates lane padding / dot_general layout / W padding / weight fusion
    # (tolerance covers the approx EUP reciprocal only).
    for fuse in (True, False):
        prep = prepare_params(params, matmul_dtype=jnp.float32, fuse=fuse)
        out = jax.block_until_ready(
            multihead_forward(x, prep, out_dtype=jnp.float32, use_pallas=True))
        assert out.shape == (B, W, nc_pad)
        assert jnp.allclose(out[..., :n_class], ref, atol=5e-3), \
            f"f32 mismatch (fuse={fuse})"
        assert jnp.allclose(out[..., n_class:], 0.0), "padded classes not zero"

    # Recommended deployment config: bf16 matmuls + bf16 output, auto fusion.
    prep = prepare_params(params)
    out = jax.block_until_ready(multihead_forward(x, prep, use_pallas=True))
    assert out.shape == (B, W, nc_pad) and out.dtype == jnp.bfloat16
    assert jnp.allclose(out[..., :n_class].astype(jnp.float32), ref, atol=3e-2), \
        "bf16 mismatch vs JAX reference"

    # Auto dispatch: shapes this small take the XLA bypass (same numerics).
    out_xla = jax.block_until_ready(multihead_forward(x, prep))
    assert jnp.allclose(out_xla[..., :n_class].astype(jnp.float32), ref, atol=3e-2)

    print("KERNEL_OK")
</pallas_src>

<mosaic_0001>
module attributes {stable_mosaic.version = 11 : i64} {
  func.func @_fused_kernel(%arg0: i32, %arg1: i32, %arg2: memref<1x32x128xf32, #tpu.memory_space<vmem>>, %arg3: memref<32x128xf32, #tpu.memory_space<vmem>>, %arg4: memref<1x128xf32, #tpu.memory_space<vmem>>, %arg5: memref<1x128x128xf32, #tpu.memory_space<vmem>>) attributes {dimension_semantics = [#tpu.dimension_semantics<parallel>, #tpu.dimension_semantics<parallel>], iteration_bounds = array<i64: 2, 1>, scalar_prefetch = 0 : i64, scratch_operands = 0 : i64, tpu.core_type = #tpu.core_type<tc>, window_params = [{transform_indices = @transform_0, window_bounds = array<i64: 1, 32, 128>}, {pipeline_mode = #tpu.pipeline_mode<synchronous>, transform_indices = @transform_1, window_bounds = array<i64: 32, 128>}, {pipeline_mode = #tpu.pipeline_mode<synchronous>, transform_indices = @transform_2, window_bounds = array<i64: 1, 128>}, {transform_indices = @transform_3, window_bounds = array<i64: 1, 128, 128>}]} {
    %c0 = arith.constant 0 : index
    %c0_0 = arith.constant 0 : index
    %c0_1 = arith.constant 0 : index
    %0 = vector.load %arg2[%c0, %c0_0, %c0_1] : memref<1x32x128xf32, #tpu.memory_space<vmem>>, vector<1x32x128xf32>
    %1 = vector.shape_cast %0 : vector<1x32x128xf32> to vector<32x128xf32>
    %c0_2 = arith.constant 0 : index
    %c0_3 = arith.constant 0 : index
    %2 = vector.load %arg3[%c0_2, %c0_3] : memref<32x128xf32, #tpu.memory_space<vmem>>, vector<32x128xf32>
    %cst = arith.constant dense<0.000000e+00> : vector<128x128xf32>
    %3 = tpu.matmul %1, %2, %cst {dimension_numbers = #tpu.dot_dimension_numbers<[0], [0], [1], [1], [0, 1, 1, 1], [], []>} : vector<32x128xf32>, vector<32x128xf32>, vector<128x128xf32> -> vector<128x128xf32>
    %c0_4 = arith.constant 0 : index
    %c0_5 = arith.constant 0 : index
    %4 = vector.load %arg4[%c0_4, %c0_5] : memref<1x128xf32, #tpu.memory_space<vmem>>, vector<1x128xf32>
    %5 = vector.broadcast %4 : vector<1x128xf32> to vector<128x128xf32>
    %6 = arith.addf %3, %5 : vector<128x128xf32>
    %cst_6 = arith.constant dense<0xFF800000> : vector<128xf32>
    %7 = vector.multi_reduction <maximumf>, %6, %cst_6 [1] : vector<128x128xf32> to vector<128xf32>
    %8 = vector.shape_cast %7 : vector<128xf32> to vector<128x1xf32>
    %9 = vector.broadcast %8 : vector<128x1xf32> to vector<128x128xf32>
    %10 = arith.subf %6, %9 : vector<128x128xf32>
    %11 = math.exp %10 : vector<128x128xf32>
    %cst_7 = arith.constant dense<0.000000e+00> : vector<128xf32>
    %12 = vector.multi_reduction <add>, %11, %cst_7 [1] : vector<128x128xf32> to vector<128xf32>
    %13 = vector.shape_cast %12 : vector<128xf32> to vector<128x1xf32>
    %14 = tpu.reciprocal %13 {approx = true} : vector<128x1xf32> -> vector<128x1xf32>
    %15 = vector.broadcast %14 : vector<128x1xf32> to vector<128x128xf32>
    %16 = arith.mulf %11, %15 : vector<128x128xf32>
    %c0_8 = arith.constant 0 : index
    %c0_9 = arith.constant 0 : index
    %c0_10 = arith.constant 0 : index
    %17 = vector.load %arg5[%c0_8, %c0_9, %c0_10] : memref<1x128x128xf32, #tpu.memory_space<vmem>>, vector<1x128x128xf32>
    %18 = vector.shape_cast %17 : vector<1x128x128xf32> to vector<128x128xf32>
    %19 = vector.shape_cast %16 : vector<128x128xf32> to vector<1x128x128xf32>
    tpu.vector_store %arg5[%c0_8, %c0_9, %c0_10], %19 {strides = array<i32>} : memref<1x128x128xf32, #tpu.memory_space<vmem>>, vector<1x128x128xf32>,
    return
  }
  func.func @transform_0(%arg0: i32, %arg1: i32) -> (i32, i32, i32) {
    %c0_i32 = arith.constant 0 : i32
    %c0_i32_0 = arith.constant 0 : i32
    return %arg0, %c0_i32, %arg1 : i32, i32, i32
  }
  func.func @transform_1(%arg0: i32, %arg1: i32) -> (i32, i32) {
    %c0_i32 = arith.constant 0 : i32
    %c0_i32_0 = arith.constant 0 : i32
    %c0_i32_1 = arith.constant 0 : i32
    return %c0_i32, %c0_i32_0 : i32, i32
  }
  func.func @transform_2(%arg0: i32, %arg1: i32) -> (i32, i32) {
    %c0_i32 = arith.constant 0 : i32
    %c0_i32_0 = arith.constant 0 : i32
    %c0_i32_1 = arith.constant 0 : i32
    return %c0_i32, %c0_i32_0 : i32, i32
  }
  func.func @transform_3(%arg0: i32, %arg1: i32) -> (i32, i32, i32) {
    %c0_i32 = arith.constant 0 : i32
    %c0_i32_0 = arith.constant 0 : i32
    return %arg0, %arg1, %c0_i32 : i32, i32, i32
  }
}

</mosaic_0001>

<bundles_post_ra>
// kernel: tpu_custom_call.1
= control target key start
LH: loop header
LB: loop body
LE: loop exit
PB: predicated region body
PF: predicated region fallthrough
CT: control target
= control target key end

     0   :  { %s1329_s0 = inlined_call_operand.hbm [shape: f32[2,32,128], index: 0, kind: input, shape index: {}]   ;;  %s1330_s1 = inlined_call_operand.hbm [shape: f32[32,128], index: 1, kind: input, shape index: {}]   ;;  %s1331_s2 = inlined_call_operand.vmem [shape: f32[1,128], index: 2, kind: input, shape index: {}]   ;;  %s1332_s3 = inlined_call_operand.hbm [shape: f32[2,128,128], index: 3, kind: output, shape index: {}]  }
   0x1   :  { %1334 = sst [smem:[#allocation11_spill]] %s1330_s1 }
   0x2   :  { %8 = vsyncpa [#allocation3], 0 }
   0x3   :  { %10 = vsyncpa [#allocation3 + $0x1], 0 }
   0x4   :  { %11 = vsyncpa [#allocation6], 0 }
   0x5   :  { %12 = vsyncpa [#allocation4], 0 }
   0x6   :  { %14 = vsyncpa [#allocation4 + $0x1], 0  ;;  %s1021_s12 = smov 0   ;;  %s1023_s13 = smov 0  }
   0x7   :  { %s1025_s14 = smov 0   ;;  %s1027_s15 = smov 0  }
   0x8   :  { %s1029_s16 = smov 0   ;;  %s1031_s17 = smov 0  }
   0x9 LB: > { %s658_s18 = sadd.s32 4294967295, %s994_s17   ;;  %s659_s19 = sadd.s32 4294967294, %s994_s17   ;;  %s994_s17 = sphi %s1031_s17, %s20_s17   ;;  %s990_s16 = sphi %s1029_s16, %s1348_s16   ;;  %s986_s15 = sphi %s1027_s15, %s1347_s15   ;;  %s982_s14 = sphi %s1025_s14, %s1346_s14   ;;  %s978_s13 = sphi %s1023_s13, %s1345_s13   ;;  %s974_s12 = sphi %s1021_s12, %s1344_s12  }
   0xa   : > { %p54_p0 = scmp.ne.s32.totalorder %s978_s13, %s974_s12  ;;  %p1055_p1 = scmp.eq.s32.totalorder %s658_s18, 0 }
   0xb   : > { %p1059_p2 = scmp.eq.s32.totalorder %s658_s18, 1  ;;  %p128_p3 = scmp.eq.s32.totalorder %s659_s19, 1 }
   0xc   : > { %p1065_p4 = por %p1055_p1, %p54_p0  ;;  %p660_p5 = scmp.ge.s32.totalorder %s994_s17, 1 }
   0xd   : > { %p1070_p6 = por %p128_p3, %p54_p0  ;;  %p135_p7 = scmp.lt.s32.totalorder %s994_s17, 3 }
   0xe   : > { %s1339_s1 = sld [smem:[#allocation11_spill]]  ;;  %s996_s28 = smov [#allocation5]  }
   0xf   : > { %p1078_p8 = pnand %p660_p5, %p135_p7  ;;  %s148_s29 = sshll.u32 %s996_s28, 4  ;;  %s149_s29 = int_to_ptr.vmem [resolvable:$true] %s148_s29 }
  0x10   : > { %p662_p11 = scmp.ge.s32.totalorder %s994_s17, 2  ;;  %s1333_s30 = smov 128  }
  0x11   : > { %p713_p9 = pneg %p1078_p8  ;;  %s998_s4 = smov 8  }
  0x12   : > { %s32_s5 = sadd.s32 1, %s990_s16  ;;  %s41_s6 = sadd.s32 1, %s982_s14 }
  0x13   : > { %p714_p10 = pnand %p713_p9, %p1055_p1  ;;  %p34_p12 = scmp.ge.s32.totalorder %s32_s5, 2 }
  0x14   : > { %s146_s26 = sshll.u32 %s1339_s1, 4  ;;  %p48_p13 = scmp.ne.s32.totalorder %s982_s14, %s978_s13  ;;  %s147_s26 = int_to_ptr.hbm [resolvable:$true] %s146_s26 }
  0x15   : > { %716 = dma.hbm_to_vmem [thread:$0]  (!%p714_p10), %s147_s26, 512, %s149_s29, [#allocation6], %s1333_s30, %s1333_s30, %s998_s4  }
  0x16   : > { %p49_p0 = scmp.eq.s32.totalorder %s994_s17, 0  ;;  %s1350_s5 = smov (%p34_p12, %s32_s5), 0 }
  0x17   : > { %p1103_p5 = por %p1059_p2, %p48_p13  ;;  %s36_s9 = ssub.s32 %s990_s16, %s1350_s5 }
  0x18   : > { %p1097_p3 = por %p49_p0, %p48_p13  ;;  %p726_p7 = scmp.lt.s32.totalorder %s994_s17, 2 }
  0x19   : > { %p39_p9 = scmp.eq.s32.totalorder %s36_s9, 0  ;;  %s165_s10 = sand.u32 1, %s982_s14  }
  0x1a   : > { %s663_s11 = sshll.u32 %s165_s10, 5  ;;  %s691_s19 = sshll.u32 %s990_s16, 5 }
  0x1b   : > { %s1112_s18 = scalar_select %p39_p9, %s982_s14, %s41_s6  }
  0x1c   : > { %s175_s26 = scalar_lea.hbm %s1329_s0, %s691_s19  ;;  %s169_s28 = scalar_lea.vmem [#allocation2], %s663_s11 }
  0x1d   : > { %s178_s29 = sshll.u32 %s169_s28, 4  ;;  %s176_s21 = sshll.u32 %s175_s26, 4  ;;  %s179_s29 = int_to_ptr.vmem [resolvable:$true] %s178_s29  ;;  %s177_s21 = int_to_ptr.hbm [resolvable:$true] %s176_s21 }
  0x1e   : > { %p718_p2 = pnand %p726_p7, %p1097_p3  ;;  %s166_s30 = scalar_lea.sflag [#allocation3], %s165_s10 }
  0x1f   : > { %s1343_s1 = smov 128   ;;  %190 = sbr.rel (%p1078_p8) target bundleno = 715 (0x2cb), region = 32 }
  0x20   : > { %720 = dma.hbm_to_vmem [thread:$0]  (!%p718_p2), %s177_s21, 512, %s179_s29, %s166_s30, %s1343_s1, %s1343_s1, %s998_s4  }
  0x21   : > { %s1126_s6 = sand.u32 (!%p1078_p8), 1, %s978_s13  }
  0x22   : > { %s667_s9 = sshll.u32 (!%p1078_p8), %s1126_s6, 5  ;;  %s193_s11 = scalar_lea.sflag (!%p1078_p8), [#allocation3], %s1126_s6 }
  0x23   : > { %s1130_s19 = scalar_lea.vmem (!%p1078_p8), [#allocation2], %s667_s9 }
  0x24   : > { %961 = dma.done.wait (%p1065_p4), %s193_s11, 512  }
  0x25   : > { %963 = vsyncadd (%p1065_p4), %s193_s11, 4294966784 }
  0x26   : > { %965 = dma.done.wait (%p1055_p1), [#allocation6], 512  }
  0x27   : > { %967 = vsyncadd (%p1055_p1), [#allocation6], 4294966784  ;;  %v226_v0 = vld [vmem:[%s1130_s19] sm:$0xff]  ;;  %v233_v1 = vld [vmem:[#allocation5 + $0x18] sm:$0xff]  ;;  %vm270_vm0 = vcmask 261120   ;;  %s669_s22 = sshll.u32 %s1126_s6, 7 }
  0x28   : > { %238 = vxpose.xlu0.b32.start [1/4] (short) %v226_v0, 128  ;;  %v232_v2 = vld [vmem:[#allocation5 + $0x10] sm:$0xff]  ;;  %331 = vmatpush.msra.mxu0 %v233_v1  ;;  %v231_v3 = vld [vmem:[#allocation5 + $0x8] sm:$0xff]  ;;  %v230_v4 = vld [vmem:[#allocation5] sm:$0xff]  ;;  %s1256_s27 = scalar_lea.vmem [#allocation7], %s669_s22  ;;  %s692_s30 = sshll.u32 %s986_s15, 7 }
  0x29   : > { %693 = vmatpush.msra.mxu1 %v233_v1  ;;  %694 = vmatpush.msra.mxu2 %v233_v1  ;;  %v227_v5 = vld [vmem:[%s1130_s19 + $0x8] sm:$0xff]  ;;  %v228_v6 = vld [vmem:[%s1130_s19 + $0x10] sm:$0xff]  ;;  %v229_v7 = vld [vmem:[%s1130_s19 + $0x18] sm:$0xff]  ;;  %s558_s10 = scalar_lea.hbm %s1332_s3, %s692_s30  ;;  %s559_s24 = sshll.u32 %s1256_s27, 4  ;;  %s560_s24 = int_to_ptr.vmem [resolvable:$true] %s559_s24 }
  0x2a   : > { %695 = vmatpush.msra.mxu3 %v233_v1  ;;  %332 = vmatpush.msra.mxu0 %v232_v2  ;;  %v783_v24 = vld [vmem:[%s1331_s2] ss:$0 sm:$0xff]  ;;  %s561_s25 = sshll.u32 %s558_s10, 4  ;;  %s545_s15 = scalar_lea.sflag [#allocation4], %s1126_s6  ;;  %s562_s25 = int_to_ptr.hbm [resolvable:$true] %s561_s25 }
  0x2b   : > { %696 = vmatpush.msra.mxu1 %v232_v2  ;;  %697 = vmatpush.msra.mxu2 %v232_v2  ;;  %s922_s26 = sshra.s32 %s562_s25, 4  ;;  %s928_s9 = scalar_lea.hbm %s1332_s3, 256  ;;  %s923_s26 = int_to_ptr.hbm [resolvable:$true] %s922_s26 }
  0x2c   : > { %698 = vmatpush.msra.mxu3 %v232_v2  ;;  %333 = vmatpush.msra.mxu0 %v231_v3  ;;  %s924_s28 = scalar_lea.hbm %s923_s26, 128  ;;  %p929_p10 = scmp.lt.s32.totalorder %s923_s26, %s1332_s3 }
  0x2d   : > { %699 = vmatpush.msra.mxu1 %v231_v3  ;;  %700 = vmatpush.msra.mxu2 %v231_v3  ;;  %p925_p1 = scmp.ne.s32.totalorder %s923_s26, %s924_s28  ;;  %p930_p12 = scmp.lt.s32.totalorder %s928_s9, %s924_s28 }
  0x2e   : > { %701 = vmatpush.msra.mxu3 %v231_v3  ;;  %334 = vmatpush.msra.mxu0 %v230_v4 }
  0x2f   : > { %702 = vmatpush.msra.mxu1 %v230_v4  ;;  %703 = vmatpush.msra.mxu2 %v230_v4  ;;  %p926_p4 = pnand %p925_p1, %p1103_p5  ;;  %p931_p13 = por %p930_p12, %p929_p10 }
  0x30   : > { %239 = vxpose.xlu0.b32.cont [2/4] (short) %v227_v5, 128  ;;  %704 = vmatpush.msra.mxu3 %v230_v4 }
  0x31   : > { %p927_p8 = pneg %p926_p4 }
  0x33   : > { %p932_p0 = pnand %p931_p13, %p927_p8 }
  0x38   : > { %240 = vxpose.xlu0.b32.cont [3/4] (short) %v228_v6, 128 }
  0x40   : > { %241 = vxpose.xlu0.b32.end [4/4] (short) %v229_v7, 128 }
  0xcc   : > { %v254_v8 = vpop.trf.xlu0 }
  0xcd   : > { %670 = vmatmul.msk.f32.vlgmr.msra.gmra.mxu0 %vm270_vm0, %v254_v8 }
  0xd4   : > { %v255_v9 = vpop.trf.xlu0 }
  0xd5   : > { %671 = vmatmul.msk.f32.gmra.mxu0 %vm270_vm0, %v255_v9 }
  0xdc   : > { %v256_v10 = vpop.trf.xlu0 }
  0xdd   : > { %672 = vmatmul.msk.f32.gmra.mxu0 %vm270_vm0, %v256_v10 }
  0xe4   : > { %v257_v11 = vpop.trf.xlu0 }
  0xe5   : > { %673 = vmatmul.msk.f32.gmra.mxu0 %vm270_vm0, %v257_v11 }
  0xec   : > { %v258_v12 = vpop.trf.xlu0 }
  0xed   : > { %674 = vmatmul.msk.f32.vlgmr.msra.gmra.mxu1 %vm270_vm0, %v258_v12 }
  0xf4   : > { %v259_v13 = vpop.trf.xlu0 }
  0xf5   : > { %675 = vmatmul.msk.f32.gmra.mxu1 %vm270_vm0, %v259_v13 }
  0xfc   : > { %v260_v14 = vpop.trf.xlu0 }
  0xfd   : > { %676 = vmatmul.msk.f32.gmra.mxu1 %vm270_vm0, %v260_v14 }
 0x104   : > { %v261_v15 = vpop.trf.xlu0 }
 0x105   : > { %677 = vmatmul.msk.f32.gmra.mxu1 %vm270_vm0, %v261_v15 }
 0x10c   : > { %v262_v16 = vpop.trf.xlu0 }
 0x10d   : > { %678 = vmatmul.msk.f32.vlgmr.msra.gmra.mxu2 %vm270_vm0, %v262_v16 }
 0x114   : > { %v263_v17 = vpop.trf.xlu0 }
 0x115   : > { %679 = vmatmul.msk.f32.gmra.mxu2 %vm270_vm0, %v263_v17 }
 0x11c   : > { %v264_v18 = vpop.trf.xlu0 }
 0x11d   : > { %680 = vmatmul.msk.f32.gmra.mxu2 %vm270_vm0, %v264_v18 }
 0x124   : > { %v265_v19 = vpop.trf.xlu0 }
 0x125   : > { %681 = vmatmul.msk.f32.gmra.mxu2 %vm270_vm0, %v265_v19 }
 0x12c   : > { %v266_v20 = vpop.trf.xlu0 }
 0x12d   : > { %682 = vmatmul.msk.f32.vlgmr.msra.gmra.mxu3 %vm270_vm0, %v266_v20 }
 0x134   : > { %v267_v21 = vpop.trf.xlu0 }
 0x135   : > { %683 = vmatmul.msk.f32.gmra.mxu3 %vm270_vm0, %v267_v21 }
 0x13c   : > { %v268_v22 = vpop.trf.xlu0 }
 0x13d   : > { %684 = vmatmul.msk.f32.gmra.mxu3 %vm270_vm0, %v268_v22 }
 0x144   : > { %v269_v23 = vpop.trf.xlu0 }
 0x145   : > { %685 = vmatmul.msk.f32.gmra.mxu3 %vm270_vm0, %v269_v23 }
 0x14a   : > { %v336_v25 = vpop.f32.mrf.mxu0 }
 0x14b   : > { %v337_v26 = vadd.f32 %v783_v24, %v336_v25 }
 0x14d   : > { %384 = vmax.xlane.f32.xlu1 %v337_v26 }
 0x152   : > { %v339_v27 = vpop.f32.mrf.mxu0 }
 0x153   : > { %v340_v28 = vadd.f32 %v783_v24, %v339_v27 }
 0x155   : > { %386 = vmax.xlane.f32.xlu1 %v340_v28 }
 0x15a   : > { %v342_v29 = vpop.f32.mrf.mxu0 }
 0x15b   : > { %v343_v30 = vadd.f32 %v783_v24, %v342_v29 }
 0x15d   : > { %388 = vmax.xlane.f32.xlu2 %v343_v30 }
 0x162   : > { %v345_v31 = vpop.f32.mrf.mxu0 }
 0x163   : > { %v346_v32 = vadd.f32 %v783_v24, %v345_v31 }
 0x165   : > { %390 = vmax.xlane.f32.xlu2 %v346_v32 }
 0x16a   : > { %v348_v33 = vpop.f32.mrf.mxu1 }
 0x16b   : > { %v349_v34 = vadd.f32 %v783_v24, %v348_v33 }
 0x16d   : > { %392 = vmax.xlane.f32.xlu1 %v349_v34 }
 0x172   : > { %v351_v35 = vpop.f32.mrf.mxu1 }
 0x173   : > { %v1163_v36 = vadd.f32 %v783_v24, %v351_v35 }
 0x175   : > { %394 = vmax.xlane.f32.xlu2 %v1163_v36 }
 0x17a   : > { %v354_v37 = vpop.f32.mrf.mxu1 }
 0x17b   : > { %v1166_v38 = vadd.f32 %v783_v24, %v354_v37 }
 0x17d   : > { %396 = vmax.xlane.f32.xlu1 %v1166_v38 }
 0x182   : > { %v357_v39 = vpop.f32.mrf.mxu1 }
 0x183   : > { %v1169_v40 = vadd.f32 %v783_v24, %v357_v39 }
 0x185   : > { %398 = vmax.xlane.f32.xlu2 %v1169_v40 }
 0x190   : > { %v360_v41 = vpop.f32.mrf.mxu2 }
 0x191   : > { %v1172_v42 = vadd.f32 %v783_v24, %v360_v41 }
 0x193   : > { %400 = vmax.xlane.f32.xlu0 %v1172_v42 }
 0x198   : > { %v363_v43 = vpop.f32.mrf.mxu2 }
 0x199   : > { %v1175_v44 = vadd.f32 %v783_v24, %v363_v43 }
 0x19b   : > { %402 = vmax.xlane.f32.xlu1 %v1175_v44 }
 0x1a0   : > { %v366_v45 = vpop.f32.mrf.mxu2 }
 0x1a1   : > { %v1178_v46 = vadd.f32 %v783_v24, %v366_v45 }
 0x1a3   : > { %404 = vmax.xlane.f32.xlu2 %v1178_v46 }
 0x1a8   : > { %v369_v47 = vpop.f32.mrf.mxu2 }
 0x1a9   : > { %v1181_v48 = vadd.f32 %v783_v24, %v369_v47 }
 0x1ab   : > { %406 = vmax.xlane.f32.xlu1 %v1181_v48 }
 0x1b0   : > { %v372_v49 = vpop.f32.mrf.mxu3 }
 0x1b1   : > { %v1184_v50 = vadd.f32 %v783_v24, %v372_v49 }
 0x1b3   : > { %408 = vmax.xlane.f32.xlu2 %v1184_v50 }
 0x1b8   : > { %v375_v51 = vpop.f32.mrf.mxu3 }
 0x1b9   : > { %v1187_v52 = vadd.f32 %v783_v24, %v375_v51 }
 0x1bb   : > { %410 = vmax.xlane.f32.xlu1 %v1187_v52 }
 0x1c0   : > { %v385_v53 = vpop.xlane.xlu1 %384  ;;  %v378_v54 = vpop.f32.mrf.mxu3 }
 0x1c1   : > { %v416_v55 = vsub.f32 %v337_v26, %v385_v53  ;;  %v1190_v56 = vadd.f32 %v783_v24, %v378_v54 }
 0x1c3   : > { %v432_v57 = vmul.f32 1.442695, %v416_v55  ;;  %412 = vmax.xlane.f32.xlu2 %v1190_v56 }
 0x1c5   : > { %784 = vpow2.f32 %v432_v57 }
 0x1c8   : > { %v387_v58 = vpop.xlane.xlu1 %386  ;;  %v381_v59 = vpop.f32.mrf.mxu3 }
 0x1c9   : > { %v417_v60 = vsub.f32 %v340_v28, %v387_v58  ;;  %v1193_v61 = vadd.f32 %v783_v24, %v381_v59 }
 0x1cb   : > { %v1195_v62 = vpop.eup %784  ;;  %v434_v63 = vmul.f32 1.442695, %v417_v60  ;;  %414 = vmax.xlane.f32.xlu1 %v1193_v61 }
 0x1cc   : > { %464 = vadd.xlane.f32.xlu2 %v1195_v62 }
 0x1cd   : > { %786 = vpow2.f32 %v434_v63 }
 0x1d0   : > { %v389_v0 = vpop.xlane.xlu2 %388 }
 0x1d1   : > { %v418_v1 = vsub.f32 %v343_v30, %v389_v0 }
 0x1d3   : > { %v1199_v2 = vpop.eup %786  ;;  %v436_v3 = vmul.f32 1.442695, %v418_v1 }
 0x1d4   : > { %466 = vadd.xlane.f32.xlu1 %v1199_v2 }
 0x1d5   : > { %788 = vpow2.f32 %v436_v3 }
 0x1d8   : > { %v391_v4 = vpop.xlane.xlu2 %390 }
 0x1d9   : > { %v419_v5 = vsub.f32 %v346_v32, %v391_v4 }
 0x1db   : > { %v1202_v6 = vpop.eup %788  ;;  %v438_v7 = vmul.f32 1.442695, %v419_v5 }
 0x1dc   : > { %468 = vadd.xlane.f32.xlu2 %v1202_v6 }
 0x1dd   : > { %790 = vpow2.f32 %v438_v7 }
 0x1e0   : > { %v393_v8 = vpop.xlane.xlu1 %392 }
 0x1e1   : > { %v420_v9 = vsub.f32 %v349_v34, %v393_v8 }
 0x1e3   : > { %v1205_v10 = vpop.eup %790  ;;  %v440_v11 = vmul.f32 1.442695, %v420_v9 }
 0x1e4   : > { %470 = vadd.xlane.f32.xlu1 %v1205_v10 }
 0x1e5   : > { %792 = vpow2.f32 %v440_v11 }
 0x1e8   : > { %v395_v12 = vpop.xlane.xlu2 %394 }
 0x1e9   : > { %v421_v13 = vsub.f32 %v1163_v36, %v395_v12 }
 0x1eb   : > { %v1209_v14 = vpop.eup %792  ;;  %v442_v15 = vmul.f32 1.442695, %v421_v13 }
 0x1ec   : > { %472 = vadd.xlane.f32.xlu2 %v1209_v14 }
 0x1ed   : > { %794 = vpow2.f32 %v442_v15 }
 0x1f0   : > { %v397_v16 = vpop.xlane.xlu1 %396 }
 0x1f1   : > { %v422_v17 = vsub.f32 %v1166_v38, %v397_v16 }
 0x1f3   : > { %v1213_v18 = vpop.eup %794  ;;  %v444_v19 = vmul.f32 1.442695, %v422_v17 }
 0x1f4   : > { %474 = vadd.xlane.f32.xlu1 %v1213_v18 }
 0x1f5   : > { %796 = vpow2.f32 %v444_v19 }
 0x1f8   : > { %v399_v20 = vpop.xlane.xlu2 %398 }
 0x1f9   : > { %v423_v21 = vsub.f32 %v1169_v40, %v399_v20 }
 0x1fb   : > { %v1217_v22 = vpop.eup %796  ;;  %v446_v23 = vmul.f32 1.442695, %v423_v21 }
 0x1fc   : > { %476 = vadd.xlane.f32.xlu2 %v1217_v22 }
 0x1fd   : > { %798 = vpow2.f32 %v446_v23 }
 0x203   : > { %v1220_v24 = vpop.eup %798 }
 0x204   : > { %478 = vadd.xlane.f32.xlu1 %v1220_v24 }
 0x206   : > { %v401_v25 = vpop.xlane.xlu0 %400 }
 0x207   : > { %v424_v26 = vsub.f32 %v1172_v42, %v401_v25 }
 0x209   : > { %v448_v27 = vmul.f32 1.442695, %v424_v26 }
 0x20b   : > { %800 = vpow2.f32 %v448_v27 }
 0x20e   : > { %v403_v28 = vpop.xlane.xlu1 %402 }
 0x20f   : > { %v425_v29 = vsub.f32 %v1175_v44, %v403_v28 }
 0x211   : > { %v1225_v30 = vpop.eup %800  ;;  %v450_v31 = vmul.f32 1.442695, %v425_v29 }
 0x212   : > { %480 = vadd.xlane.f32.xlu2 %v1225_v30 }
 0x213   : > { %802 = vpow2.f32 %v450_v31 }
 0x216   : > { %v405_v32 = vpop.xlane.xlu2 %404 }
 0x217   : > { %v426_v33 = vsub.f32 %v1178_v46, %v405_v32 }
 0x219   : > { %v1229_v34 = vpop.eup %802  ;;  %v452_v35 = vmul.f32 1.442695, %v426_v33 }
 0x21a   : > { %482 = vadd.xlane.f32.xlu1 %v1229_v34 }
 0x21b   : > { %804 = vpow2.f32 %v452_v35 }
 0x21e   : > { %v407_v36 = vpop.xlane.xlu1 %406 }
 0x21f   : > { %v427_v37 = vsub.f32 %v1181_v48, %v407_v36 }
 0x221   : > { %v1233_v38 = vpop.eup %804  ;;  %v454_v39 = vmul.f32 1.442695, %v427_v37 }
 0x222   : > { %484 = vadd.xlane.f32.xlu2 %v1233_v38 }
 0x223   : > { %806 = vpow2.f32 %v454_v39 }
 0x226   : > { %v409_v40 = vpop.xlane.xlu2 %408 }
 0x227   : > { %v428_v41 = vsub.f32 %v1184_v50, %v409_v40 }
 0x229   : > { %v1237_v42 = vpop.eup %806  ;;  %v456_v43 = vmul.f32 1.442695, %v428_v41 }
 0x22a   : > { %486 = vadd.xlane.f32.xlu1 %v1237_v42 }
 0x22b   : > { %808 = vpow2.f32 %v456_v43 }
 0x22e   : > { %v411_v44 = vpop.xlane.xlu1 %410 }
 0x22f   : > { %v429_v45 = vsub.f32 %v1187_v52, %v411_v44 }
 0x231   : > { %v1241_v46 = vpop.eup %808  ;;  %v458_v47 = vmul.f32 1.442695, %v429_v45 }
 0x232   : > { %488 = vadd.xlane.f32.xlu2 %v1241_v46 }
 0x233   : > { %810 = vpow2.f32 %v458_v47 }
 0x236   : > { %v413_v48 = vpop.xlane.xlu2 %412 }
 0x237   : > { %v430_v49 = vsub.f32 %v1190_v56, %v413_v48 }
 0x239   : > { %v1245_v50 = vpop.eup %810  ;;  %v460_v51 = vmul.f32 1.442695, %v430_v49 }
 0x23a   : > { %490 = vadd.xlane.f32.xlu1 %v1245_v50 }
 0x23b   : > { %812 = vpow2.f32 %v460_v51 }
 0x23e   : > { %v415_v53 = vpop.xlane.xlu1 %414 }
 0x23f   : > { %v431_v54 = vsub.f32 %v1193_v61, %v415_v53  ;;  %v465_v52 = vpop.xlane.xlu2 %464 }
 0x240   : > { %814 = vrcp.f32 %v465_v52 }
 0x241   : > { %v1249_v55 = vpop.eup %812  ;;  %v462_v57 = vmul.f32 1.442695, %v431_v54 }
 0x242   : > { %492 = vadd.xlane.f32.xlu2 %v1249_v55 }
 0x243   : > { %816 = vpow2.f32 %v462_v57 }
 0x246   : > { %v815_v58 = vpop.eup %814 }
 0x247   : > { %v512_v56 = vmul.f32 %v815_v58, %v1195_v62  ;;  %v467_v59 = vpop.xlane.xlu1 %466 }
 0x248   : > { %818 = vrcp.f32 %v467_v59 }
 0x249   : > { %v1254_v60 = vpop.eup %816  ;;  %528 = vst [vmem:[%s1256_s27] sm:$0xff] %v512_v56 }
 0x24a   : > { %494 = vadd.xlane.f32.xlu1 %v1254_v60 }
 0x24e   : > { %v819_v61 = vpop.eup %818 }
 0x24f   : > { %v513_v63 = vmul.f32 %v819_v61, %v1199_v2  ;;  %v469_v0 = vpop.xlane.xlu2 %468 }
 0x250   : > { %820 = vrcp.f32 %v469_v0 }
 0x251   : > { %529 = vst [vmem:[%s1256_s27 + $0x8] sm:$0xff] %v513_v63 }
 0x256   : > { %v821_v62 = vpop.eup %820 }
 0x257   : > { %v514_v1 = vmul.f32 %v821_v62, %v1202_v6  ;;  %v471_v3 = vpop.xlane.xlu1 %470 }
 0x258   : > { %822 = vrcp.f32 %v471_v3 }
 0x259   : > { %530 = vst [vmem:[%s1256_s27 + $0x10] sm:$0xff] %v514_v1 }
 0x25e   : > { %v823_v4 = vpop.eup %822 }
 0x25f   : > { %v515_v5 = vmul.f32 %v823_v4, %v1205_v10  ;;  %v473_v7 = vpop.xlane.xlu2 %472 }
 0x260   : > { %824 = vrcp.f32 %v473_v7 }
 0x261   : > { %531 = vst [vmem:[%s1256_s27 + $0x18] sm:$0xff] %v515_v5 }
 0x266   : > { %v825_v8 = vpop.eup %824 }
 0x267   : > { %v516_v2 = vmul.f32 %v825_v8, %v1209_v14  ;;  %v475_v9 = vpop.xlane.xlu1 %474 }
 0x268   : > { %826 = vrcp.f32 %v475_v9 }
 0x269   : > { %532 = vst [vmem:[%s1256_s27 + $0x20] sm:$0xff] %v516_v2 }
 0x26e   : > { %v827_v11 = vpop.eup %826 }
 0x26f   : > { %v517_v6 = vmul.f32 %v827_v11, %v1213_v18  ;;  %v477_v12 = vpop.xlane.xlu2 %476 }
 0x270   : > { %828 = vrcp.f32 %v477_v12 }
 0x271   : > { %533 = vst [vmem:[%s1256_s27 + $0x28] sm:$0xff] %v517_v6 }
 0x276   : > { %v829_v13 = vpop.eup %828 }
 0x277   : > { %v518_v10 = vmul.f32 %v829_v13, %v1217_v22  ;;  %v479_v15 = vpop.xlane.xlu1 %478 }
 0x278   : > { %830 = vrcp.f32 %v479_v15 }
 0x279   : > { %534 = vst [vmem:[%s1256_s27 + $0x30] sm:$0xff] %v518_v10 }
 0x27e   : > { %v831_v16 = vpop.eup %830 }
 0x27f   : > { %v519_v14 = vmul.f32 %v831_v16, %v1220_v24 }
 0x281   : > { %535 = vst [vmem:[%s1256_s27 + $0x38] sm:$0xff] %v519_v14 }
 0x285   : > { %v481_v17 = vpop.xlane.xlu2 %480 }
 0x286   : > { %832 = vrcp.f32 %v481_v17 }
 0x28c   : > { %v833_v19 = vpop.eup %832 }
 0x28d   : > { %v520_v18 = vmul.f32 %v833_v19, %v1225_v30  ;;  %v483_v20 = vpop.xlane.xlu1 %482 }
 0x28e   : > { %834 = vrcp.f32 %v483_v20 }
 0x28f   : > { %536 = vst [vmem:[%s1256_s27 + $0x40] sm:$0xff] %v520_v18 }
 0x294   : > { %v835_v21 = vpop.eup %834 }
 0x295   : > { %v521_v22 = vmul.f32 %v835_v21, %v1229_v34  ;;  %v485_v23 = vpop.xlane.xlu2 %484 }
 0x296   : > { %836 = vrcp.f32 %v485_v23 }
 0x297   : > { %537 = vst [vmem:[%s1256_s27 + $0x48] sm:$0xff] %v521_v22 }
 0x29c   : > { %v837_v25 = vpop.eup %836 }
 0x29d   : > { %v522_v24 = vmul.f32 %v837_v25, %v1233_v38  ;;  %v487_v26 = vpop.xlane.xlu1 %486 }
 0x29e   : > { %838 = vrcp.f32 %v487_v26 }
 0x29f   : > { %538 = vst [vmem:[%s1256_s27 + $0x50] sm:$0xff] %v522_v24 }
 0x2a4   : > { %v839_v27 = vpop.eup %838 }
 0x2a5   : > { %v523_v28 = vmul.f32 %v839_v27, %v1237_v42  ;;  %v489_v29 = vpop.xlane.xlu2 %488 }
 0x2a6   : > { %840 = vrcp.f32 %v489_v29 }
 0x2a7   : > { %539 = vst [vmem:[%s1256_s27 + $0x58] sm:$0xff] %v523_v28 }
 0x2ac   : > { %v841_v30 = vpop.eup %840 }
 0x2ad   : > { %v524_v31 = vmul.f32 %v841_v30, %v1241_v46  ;;  %v491_v32 = vpop.xlane.xlu1 %490 }
 0x2ae   : > { %842 = vrcp.f32 %v491_v32 }
 0x2af   : > { %540 = vst [vmem:[%s1256_s27 + $0x60] sm:$0xff] %v524_v31 }
 0x2b4   : > { %v843_v33 = vpop.eup %842 }
 0x2b5   : > { %v525_v34 = vmul.f32 %v843_v33, %v1245_v50  ;;  %v493_v35 = vpop.xlane.xlu2 %492 }
 0x2b6   : > { %844 = vrcp.f32 %v493_v35 }
 0x2b7   : > { %541 = vst [vmem:[%s1256_s27 + $0x68] sm:$0xff] %v525_v34 }
 0x2bc   : > { %v845_v36 = vpop.eup %844 }
 0x2bd   : > { %v526_v37 = vmul.f32 %v845_v36, %v1249_v55  ;;  %v495_v38 = vpop.xlane.xlu1 %494 }
 0x2be   : > { %846 = vrcp.f32 %v495_v38 }
 0x2bf   : > { %542 = vst [vmem:[%s1256_s27 + $0x70] sm:$0xff] %v526_v37 }
 0x2c4   : > { %v847_v39 = vpop.eup %846 }
 0x2c5   : > { %v527_v40 = vmul.f32 %v847_v39, %v1254_v60 }
 0x2c7   : > { %543 = vst [vmem:[%s1256_s27 + $0x78] sm:$0xff] %v527_v40 }
 0x2c8   : > { %935 = shalt.err (!%p932_p0)
}
 0x2c9   : > { %s999_s6 = smov 128   ;;  %s1000_s1 = smov 8  }
 0x2ca   : > { %711 = dma.vmem_to_hbm [thread:$0]  (%p1103_p5), %s560_s24, 2048, %s562_s25, %s545_s15, %s999_s6, %s999_s6, %s1000_s1  }
 0x2cb PF: > { %s576_s20 = sand.u32 1, %s974_s12   ;;  %p722_p3 = pnand %p662_p11, %p1070_p6 }
 0x2cc   : > { %s577_s22 = scalar_lea.sflag [#allocation4], %s576_s20 }
 0x2cd   : > { %p723_p7 = pneg %p722_p3 }
 0x2cf   : > { %969 = dma.done.wait (%p723_p7), %s577_s22, 2048  }
 0x2d0   : > { %971 = vsyncadd (%p723_p7), %s577_s22, 4294965248  ;;  %s20_s17 = sadd.s32 1, %s994_s17   ;;  %s1344_s12 = smov %s978_s13 }
 0x2d1   : > { %p17_p9 = scmp.ge.s32.totalorder %s20_s17, 4   ;;  %s1345_s13 = smov %s982_s14 }
 0x2d2   : > { %s1346_s14 = smov %s1112_s18  ;;  %s1347_s15 = smov %s990_s16 }
 0x2d3   : > { %s1348_s16 = smov %s1350_s5  ;;  %19 = sbr.rel (!%p17_p9) target bundleno = 9 (0x9), region = 81 }
 0x2d8   :  { %583 = vsyncpa [#allocation3], 1 }
 0x2d9   :  { %585 = vsyncpa [#allocation3 + $0x1], 1 }
 0x2da   :  { %586 = vsyncpa [#allocation6], 1 }
 0x2db   :  { %587 = vsyncpa [#allocation4], 1 }
 0x2dc   :  { %589 = vsyncpa [#allocation4 + $0x1], 1 }

</bundles_post_ra>
